<compile_context>
chip_gen: v5e
topology: v5e:2x2
jax: 0.10.0
libtpu: 0.0.40
codegen_flags: <defaults>
</compile_context>

<pallas_src>
import functools

import jax
import jax.numpy as jnp
from jax.experimental import pallas as pl
from jax.experimental.pallas import tpu as pltpu

BN_EPS = 1e-5


def _round_up(v, m):
    return (v + m - 1) // m * m


@functools.partial(jax.jit, static_argnames=("stride", "padding", "dilation"))
def conv_forward(x, weight, gamma, beta, *, stride, padding, dilation):
    """Equivalent of Conv(C_in, C_out, k, stride, padding, dilation).forward(x).

    x:      [N, C_in, H, W]  (NCHW, float32)
    weight: [C_out, C_in, KH, KW]  (groups == 1, no bias)
    gamma/beta: [C_out]  (BatchNorm2d affine params; training-mode batch stats)
    returns [N, C_out, OH, OW]  (NCHW, float32)
    """
    N, C_in, H, W = x.shape
    C_out, C_in_w, KH, KW = weight.shape
    assert C_in_w == C_in, "only groups=1 supported"

    H_pad = H + 2 * padding
    W_pad = W + 2 * padding
    OH = (H_pad - dilation * (KH - 1) - 1) // stride + 1
    OW = (W_pad - dilation * (KW - 1) - 1) // stride + 1
    OH_full = H_pad - dilation * (KH - 1)     # stride-1 output extent (superset)
    OW_full = W_pad - dilation * (KW - 1)
    assert OH_full >= 1 and OW_full >= 1

    C_in_p = _round_up(C_in, 8)
    C_out_p = _round_up(C_out, 8)
    T = KH * KW

    # Flat-slab geometry: per-batch output slab of L lanes; the input slab must
    # cover the largest tap offset beyond it (zero padded, so taps that land in
    # the tail contribute garbage only to masked-out / discarded positions).
    L = _round_up(OH_full * W_pad, 128)
    o_max = (KH - 1) * dilation * W_pad + (KW - 1) * dilation
    S_pad = _round_up(o_max + L, 128)
    tap_offsets = tuple(kh * dilation * W_pad + kw * dilation
                        for kh in range(KH) for kw in range(KW))

    # ---- wrapper-side prep (all ~x-sized, bf16 from the start) ----------------
    xr = jnp.maximum(x, 0.0).astype(jnp.bfloat16)           # ReLU + cast ONCE
    xp = jnp.pad(xr, ((0, 0), (0, C_in_p - C_in),
                      (padding, padding), (padding, padding)))
    xp_flat = xp.reshape(N, C_in_p, H_pad * W_pad)
    xp_flat = jnp.pad(xp_flat, ((0, 0), (0, 0), (0, S_pad - H_pad * W_pad)))

    # Per-tap weights: w_taps[kh*KW + kw, co, ci] = weight[co, ci, kh, kw]
    w_taps = jnp.transpose(weight, (2, 3, 0, 1)).reshape(T, C_out, C_in)
    w_taps = jnp.pad(w_taps, ((0, 0), (0, C_out_p - C_out),
                              (0, C_in_p - C_in))).astype(jnp.bfloat16)

    # Mask selecting valid (strided, in-bounds) output positions in the flat slab,
    # so BN statistics are taken over exactly the N*OH*OW real outputs.
    j = jnp.arange(L, dtype=jnp.int32)
    r, c = j // W_pad, j % W_pad
    valid = ((r % stride == 0) & (r // stride < OH)
             & (c % stride == 0) & (c // stride < OW))
    mask = valid.astype(jnp.float32).reshape(1, L)

    def _conv_acc(w_ref, x_ref):
        """Stride-1 conv over the flat slab: f32 accumulation of T tap matmuls."""
        x2d = x_ref[0]                                      # [C_in_p, S_pad] bf16
        acc = jnp.zeros((C_out_p, L), jnp.float32)
        for t, off in enumerate(tap_offsets):               # static lane offsets
            acc += jnp.dot(w_ref[t], x2d[:, off:off + L],
                           preferred_element_type=jnp.float32)
        return acc

    def _stats_kernel(w_ref, x_ref, m_ref, psum_ref, pssq_ref):
        # Pass 1: conv in registers, emit per-batch partial BN statistics only.
        y = _conv_acc(w_ref, x_ref) * m_ref[...]
        psum_ref[0] = jnp.sum(y, axis=1, keepdims=True)
        pssq_ref[0] = jnp.sum(y * y, axis=1, keepdims=True)

    def _apply_kernel(w_ref, x_ref, a_ref, b_ref, o_ref):
        # Pass 2: recompute conv (cheaper than a y intermediate) + folded BN FMA.
        y = _conv_acc(w_ref, x_ref)
        o_ref[0] = y * a_ref[...] + b_ref[...]

    w_spec = pl.BlockSpec((T, C_out_p, C_in_p), lambda n: (0, 0, 0))
    x_spec = pl.BlockSpec((1, C_in_p, S_pad), lambda n: (n, 0, 0))
    cparams = pltpu.CompilerParams(dimension_semantics=("parallel",),
                                   vmem_limit_bytes=32 * 1024 * 1024)

    x_bytes = xp_flat.size * 2
    w_bytes = w_taps.size * 2
    conv_flops = 2 * N * T * C_out_p * C_in_p * L

    # ---- pass 1: per-batch partial BN statistics -------------------------------
    cost1 = pl.CostEstimate(flops=conv_flops + 4 * N * C_out_p * L,
                            transcendentals=0,
                            bytes_accessed=x_bytes + w_bytes + mask.size * 4
                            + 2 * N * C_out_p * 4)
    psum, pssq = pl.pallas_call(
        _stats_kernel,
        out_shape=(jax.ShapeDtypeStruct((N, C_out_p, 1), jnp.float32),
                   jax.ShapeDtypeStruct((N, C_out_p, 1), jnp.float32)),
        grid=(N,),
        in_specs=[w_spec, x_spec, pl.BlockSpec((1, L), lambda n: (0, 0))],
        out_specs=(pl.BlockSpec((1, C_out_p, 1), lambda n: (n, 0, 0)),
                   pl.BlockSpec((1, C_out_p, 1), lambda n: (n, 0, 0))),
        compiler_params=cparams,
        cost_estimate=cost1,
    )(w_taps, xp_flat, mask)

    # Tiny cross-batch reduction + BN fold in plain JAX (N*C_out values).
    cnt = jnp.float32(N * OH * OW)
    mean = jnp.sum(psum, axis=0) / cnt                       # [C_out_p, 1]
    var = jnp.maximum(jnp.sum(pssq, axis=0) / cnt - mean * mean, 0.0)
    gamma_p = jnp.pad(gamma.astype(jnp.float32), (0, C_out_p - C_out)).reshape(C_out_p, 1)
    beta_p = jnp.pad(beta.astype(jnp.float32), (0, C_out_p - C_out)).reshape(C_out_p, 1)
    a = gamma_p * jax.lax.rsqrt(var + BN_EPS)
    b = beta_p - mean * a

    # ---- pass 2: conv recompute + folded BN, lane-dense batch-major output -----
    cost2 = pl.CostEstimate(flops=conv_flops + 2 * N * C_out_p * L,
                            transcendentals=0,
                            bytes_accessed=x_bytes + w_bytes + 2 * C_out_p * 4
                            + N * C_out_p * L * 4)
    y_full = pl.pallas_call(
        _apply_kernel,
        out_shape=jax.ShapeDtypeStruct((N, C_out_p, L), jnp.float32),
        grid=(N,),
        in_specs=[w_spec, x_spec,
                  pl.BlockSpec((C_out_p, 1), lambda n: (0, 0)),
                  pl.BlockSpec((C_out_p, 1), lambda n: (0, 0))],
        out_specs=pl.BlockSpec((1, C_out_p, L), lambda n: (n, 0, 0)),
        compiler_params=cparams,
        cost_estimate=cost2,
    )(w_taps, xp_flat, a, b)

    # Epilogue: per-batch reshape + column slice (no transpose) to NCHW.
    y4 = y_full[:, :C_out, :OH_full * W_pad].reshape(N, C_out, OH_full, W_pad)
    return y4[:, :, ::stride, ::stride][:, :, :OH, :OW]


def _reference(x, weight, gamma, beta, *, stride, padding, dilation,
               conv_dtype=jnp.float32):
    """Pure-JAX reference (ReLU -> conv -> training-mode BatchNorm2d)."""
    xr = jnp.maximum(x, 0.0)
    y = jax.lax.conv_general_dilated(
        xr.astype(conv_dtype), weight.astype(conv_dtype),
        window_strides=(stride, stride),
        padding=[(padding, padding), (padding, padding)],
        rhs_dilation=(dilation, dilation),
        dimension_numbers=("NCHW", "OIHW", "NCHW"),
        preferred_element_type=jnp.float32,
    )
    mean = jnp.mean(y, axis=(0, 2, 3), keepdims=True)
    var = jnp.mean(jnp.square(y - mean), axis=(0, 2, 3), keepdims=True)
    y_hat = (y - mean) * jax.lax.rsqrt(var + BN_EPS)
    return y_hat * gamma.reshape(1, -1, 1, 1) + beta.reshape(1, -1, 1, 1)


if __name__ == "__main__":
    # Module hyper-params (small): Conv(C_in=4, C_out=8, kernel_size=3,
    # stride=1, padding=2, dilation=2)  -> dilated 3x3, same spatial size.
    C_in, C_out = 4, 8
    kernel_size, stride, padding, dilation = 3, 1, 2, 2
    N, H, W = 2, 16, 16

    key = jax.random.PRNGKey(0)
    kx, kw = jax.random.split(key)
    x = jax.random.normal(kx, (N, C_in, H, W), dtype=jnp.float32)
    weight = 0.1 * jax.random.normal(
        kw, (C_out, C_in, kernel_size, kernel_size), dtype=jnp.float32)
    # BatchNorm2d(affine=True) init: gamma = 1, beta = 0.
    gamma = jnp.ones((C_out,), dtype=jnp.float32)
    beta = jnp.zeros((C_out,), dtype=jnp.float32)

    out = conv_forward(x, weight, gamma, beta,
                       stride=stride, padding=padding, dilation=dilation)
    out = jax.block_until_ready(out)

    ref_bf16 = _reference(x, weight, gamma, beta, stride=stride, padding=padding,
                          dilation=dilation, conv_dtype=jnp.bfloat16)
    ref_f32 = _reference(x, weight, gamma, beta, stride=stride, padding=padding,
                         dilation=dilation)
    assert out.shape == ref_f32.shape == (N, C_out, H, W)
    # Precision-matched check (bf16 MXU inputs, f32 accumulation).
    assert jnp.max(jnp.abs(out - ref_bf16)) < 3e-3, "mismatch vs bf16-matched reference"
    # Sanity check vs the full-f32 (torch-equivalent) reference.
    assert jnp.max(jnp.abs(out - ref_f32)) < 5e-2, "mismatch vs f32 reference"

    print("KERNEL_OK")
</pallas_src>

<mosaic_0001>
module attributes {stable_mosaic.version = 11 : i64} {
  func.func @_stats_kernel(%arg0: i32, %arg1: memref<9x8x8xbf16, #tpu.memory_space<vmem>>, %arg2: memref<1x8x512xbf16, #tpu.memory_space<vmem>>, %arg3: memref<1x384xf32, #tpu.memory_space<vmem>>, %arg4: memref<1x8x1xf32, #tpu.memory_space<vmem>>, %arg5: memref<1x8x1xf32, #tpu.memory_space<vmem>>) attributes {dimension_semantics = [#tpu.dimension_semantics<parallel>], iteration_bounds = array<i64: 2>, scalar_prefetch = 0 : i64, scratch_operands = 0 : i64, tpu.core_type = #tpu.core_type<tc>, window_params = [{pipeline_mode = #tpu.pipeline_mode<synchronous>, transform_indices = @transform_0, window_bounds = array<i64: 9, 8, 8>}, {transform_indices = @transform_1, window_bounds = array<i64: 1, 8, 512>}, {pipeline_mode = #tpu.pipeline_mode<synchronous>, transform_indices = @transform_2, window_bounds = array<i64: 1, 384>}, {transform_indices = @transform_3, window_bounds = array<i64: 1, 8, 1>}, {transform_indices = @transform_4, window_bounds = array<i64: 1, 8, 1>}]} {
    %c0 = arith.constant 0 : index
    %c0_0 = arith.constant 0 : index
    %c0_1 = arith.constant 0 : index
    %0 = vector.load %arg2[%c0, %c0_0, %c0_1] : memref<1x8x512xbf16, #tpu.memory_space<vmem>>, vector<1x8x512xbf16>
    %1 = vector.shape_cast %0 : vector<1x8x512xbf16> to vector<8x512xbf16>
    %cst = arith.constant 0.000000e+00 : f32
    %2 = vector.broadcast %cst : f32 to vector<8x384xf32>
    %c0_2 = arith.constant 0 : index
    %c0_3 = arith.constant 0 : index
    %c0_4 = arith.constant 0 : index
    %3 = vector.load %arg1[%c0_2, %c0_3, %c0_4] : memref<9x8x8xbf16, #tpu.memory_space<vmem>>, vector<1x8x8xbf16>
    %4 = vector.shape_cast %3 : vector<1x8x8xbf16> to vector<8x8xbf16>
    %5 = vector.extract_strided_slice %1 {offsets = [0, 0], sizes = [8, 384], strides = [1, 1]} : vector<8x512xbf16> to vector<8x384xbf16>
    %cst_5 = arith.constant dense<0.000000e+00> : vector<8x384xf32>
    %6 = tpu.matmul %4, %5, %cst_5 {dimension_numbers = #tpu.dot_dimension_numbers<[1], [0], [0], [1], [0, 0, 1, 1], [], []>} : vector<8x8xbf16>, vector<8x384xbf16>, vector<8x384xf32> -> vector<8x384xf32>
    %7 = arith.addf %2, %6 : vector<8x384xf32>
    %c1 = arith.constant 1 : index
    %c0_6 = arith.constant 0 : index
    %c0_7 = arith.constant 0 : index
    %8 = vector.load %arg1[%c1, %c0_6, %c0_7] : memref<9x8x8xbf16, #tpu.memory_space<vmem>>, vector<1x8x8xbf16>
    %9 = vector.shape_cast %8 : vector<1x8x8xbf16> to vector<8x8xbf16>
    %10 = vector.extract_strided_slice %1 {offsets = [0, 2], sizes = [8, 384], strides = [1, 1]} : vector<8x512xbf16> to vector<8x384xbf16>
    %cst_8 = arith.constant dense<0.000000e+00> : vector<8x384xf32>
    %11 = tpu.matmul %9, %10, %cst_8 {dimension_numbers = #tpu.dot_dimension_numbers<[1], [0], [0], [1], [0, 0, 1, 1], [], []>} : vector<8x8xbf16>, vector<8x384xbf16>, vector<8x384xf32> -> vector<8x384xf32>
    %12 = arith.addf %7, %11 : vector<8x384xf32>
    %c2 = arith.constant 2 : index
    %c0_9 = arith.constant 0 : index
    %c0_10 = arith.constant 0 : index
    %13 = vector.load %arg1[%c2, %c0_9, %c0_10] : memref<9x8x8xbf16, #tpu.memory_space<vmem>>, vector<1x8x8xbf16>
    %14 = vector.shape_cast %13 : vector<1x8x8xbf16> to vector<8x8xbf16>
    %15 = vector.extract_strided_slice %1 {offsets = [0, 4], sizes = [8, 384], strides = [1, 1]} : vector<8x512xbf16> to vector<8x384xbf16>
    %cst_11 = arith.constant dense<0.000000e+00> : vector<8x384xf32>
    %16 = tpu.matmul %14, %15, %cst_11 {dimension_numbers = #tpu.dot_dimension_numbers<[1], [0], [0], [1], [0, 0, 1, 1], [], []>} : vector<8x8xbf16>, vector<8x384xbf16>, vector<8x384xf32> -> vector<8x384xf32>
    %17 = arith.addf %12, %16 : vector<8x384xf32>
    %c3 = arith.constant 3 : index
    %c0_12 = arith.constant 0 : index
    %c0_13 = arith.constant 0 : index
    %18 = vector.load %arg1[%c3, %c0_12, %c0_13] : memref<9x8x8xbf16, #tpu.memory_space<vmem>>, vector<1x8x8xbf16>
    %19 = vector.shape_cast %18 : vector<1x8x8xbf16> to vector<8x8xbf16>
    %20 = vector.extract_strided_slice %1 {offsets = [0, 40], sizes = [8, 384], strides = [1, 1]} : vector<8x512xbf16> to vector<8x384xbf16>
    %cst_14 = arith.constant dense<0.000000e+00> : vector<8x384xf32>
    %21 = tpu.matmul %19, %20, %cst_14 {dimension_numbers = #tpu.dot_dimension_numbers<[1], [0], [0], [1], [0, 0, 1, 1], [], []>} : vector<8x8xbf16>, vector<8x384xbf16>, vector<8x384xf32> -> vector<8x384xf32>
    %22 = arith.addf %17, %21 : vector<8x384xf32>
    %c4 = arith.constant 4 : index
    %c0_15 = arith.constant 0 : index
    %c0_16 = arith.constant 0 : index
    %23 = vector.load %arg1[%c4, %c0_15, %c0_16] : memref<9x8x8xbf16, #tpu.memory_space<vmem>>, vector<1x8x8xbf16>
    %24 = vector.shape_cast %23 : vector<1x8x8xbf16> to vector<8x8xbf16>
    %25 = vector.extract_strided_slice %1 {offsets = [0, 42], sizes = [8, 384], strides = [1, 1]} : vector<8x512xbf16> to vector<8x384xbf16>
    %cst_17 = arith.constant dense<0.000000e+00> : vector<8x384xf32>
    %26 = tpu.matmul %24, %25, %cst_17 {dimension_numbers = #tpu.dot_dimension_numbers<[1], [0], [0], [1], [0, 0, 1, 1], [], []>} : vector<8x8xbf16>, vector<8x384xbf16>, vector<8x384xf32> -> vector<8x384xf32>
    %27 = arith.addf %22, %26 : vector<8x384xf32>
    %c5 = arith.constant 5 : index
    %c0_18 = arith.constant 0 : index
    %c0_19 = arith.constant 0 : index
    %28 = vector.load %arg1[%c5, %c0_18, %c0_19] : memref<9x8x8xbf16, #tpu.memory_space<vmem>>, vector<1x8x8xbf16>
    %29 = vector.shape_cast %28 : vector<1x8x8xbf16> to vector<8x8xbf16>
    %30 = vector.extract_strided_slice %1 {offsets = [0, 44], sizes = [8, 384], strides = [1, 1]} : vector<8x512xbf16> to vector<8x384xbf16>
    %cst_20 = arith.constant dense<0.000000e+00> : vector<8x384xf32>
    %31 = tpu.matmul %29, %30, %cst_20 {dimension_numbers = #tpu.dot_dimension_numbers<[1], [0], [0], [1], [0, 0, 1, 1], [], []>} : vector<8x8xbf16>, vector<8x384xbf16>, vector<8x384xf32> -> vector<8x384xf32>
    %32 = arith.addf %27, %31 : vector<8x384xf32>
    %c6 = arith.constant 6 : index
    %c0_21 = arith.constant 0 : index
    %c0_22 = arith.constant 0 : index
    %33 = vector.load %arg1[%c6, %c0_21, %c0_22] : memref<9x8x8xbf16, #tpu.memory_space<vmem>>, vector<1x8x8xbf16>
    %34 = vector.shape_cast %33 : vector<1x8x8xbf16> to vector<8x8xbf16>
    %35 = vector.extract_strided_slice %1 {offsets = [0, 80], sizes = [8, 384], strides = [1, 1]} : vector<8x512xbf16> to vector<8x384xbf16>
    %cst_23 = arith.constant dense<0.000000e+00> : vector<8x384xf32>
    %36 = tpu.matmul %34, %35, %cst_23 {dimension_numbers = #tpu.dot_dimension_numbers<[1], [0], [0], [1], [0, 0, 1, 1], [], []>} : vector<8x8xbf16>, vector<8x384xbf16>, vector<8x384xf32> -> vector<8x384xf32>
    %37 = arith.addf %32, %36 : vector<8x384xf32>
    %c7 = arith.constant 7 : index
    %c0_24 = arith.constant 0 : index
    %c0_25 = arith.constant 0 : index
    %38 = vector.load %arg1[%c7, %c0_24, %c0_25] : memref<9x8x8xbf16, #tpu.memory_space<vmem>>, vector<1x8x8xbf16>
    %39 = vector.shape_cast %38 : vector<1x8x8xbf16> to vector<8x8xbf16>
    %40 = vector.extract_strided_slice %1 {offsets = [0, 82], sizes = [8, 384], strides = [1, 1]} : vector<8x512xbf16> to vector<8x384xbf16>
    %cst_26 = arith.constant dense<0.000000e+00> : vector<8x384xf32>
    %41 = tpu.matmul %39, %40, %cst_26 {dimension_numbers = #tpu.dot_dimension_numbers<[1], [0], [0], [1], [0, 0, 1, 1], [], []>} : vector<8x8xbf16>, vector<8x384xbf16>, vector<8x384xf32> -> vector<8x384xf32>
    %42 = arith.addf %37, %41 : vector<8x384xf32>
    %c8 = arith.constant 8 : index
    %c0_27 = arith.constant 0 : index
    %c0_28 = arith.constant 0 : index
    %43 = vector.load %arg1[%c8, %c0_27, %c0_28] : memref<9x8x8xbf16, #tpu.memory_space<vmem>>, vector<1x8x8xbf16>
    %44 = vector.shape_cast %43 : vector<1x8x8xbf16> to vector<8x8xbf16>
    %45 = vector.extract_strided_slice %1 {offsets = [0, 84], sizes = [8, 384], strides = [1, 1]} : vector<8x512xbf16> to vector<8x384xbf16>
    %cst_29 = arith.constant dense<0.000000e+00> : vector<8x384xf32>
    %46 = tpu.matmul %44, %45, %cst_29 {dimension_numbers = #tpu.dot_dimension_numbers<[1], [0], [0], [1], [0, 0, 1, 1], [], []>} : vector<8x8xbf16>, vector<8x384xbf16>, vector<8x384xf32> -> vector<8x384xf32>
    %47 = arith.addf %42, %46 : vector<8x384xf32>
    %c0_30 = arith.constant 0 : index
    %c0_31 = arith.constant 0 : index
    %48 = vector.load %arg3[%c0_30, %c0_31] : memref<1x384xf32, #tpu.memory_space<vmem>>, vector<1x384xf32>
    %49 = vector.broadcast %48 : vector<1x384xf32> to vector<8x384xf32>
    %50 = arith.mulf %47, %49 : vector<8x384xf32>
    %cst_32 = arith.constant dense<0.000000e+00> : vector<8xf32>
    %51 = vector.multi_reduction <add>, %50, %cst_32 [1] : vector<8x384xf32> to vector<8xf32>
    %52 = vector.shape_cast %51 : vector<8xf32> to vector<8x1xf32>
    %c0_33 = arith.constant 0 : index
    %c0_34 = arith.constant 0 : index
    %c0_35 = arith.constant 0 : index
    %53 = vector.load %arg4[%c0_33, %c0_34, %c0_35] : memref<1x8x1xf32, #tpu.memory_space<vmem>>, vector<1x8x1xf32>
    %54 = vector.shape_cast %53 : vector<1x8x1xf32> to vector<8x1xf32>
    %55 = vector.shape_cast %52 : vector<8x1xf32> to vector<1x8x1xf32>
    tpu.vector_store %arg4[%c0_33, %c0_34, %c0_35], %55 {strides = array<i32>} : memref<1x8x1xf32, #tpu.memory_space<vmem>>, vector<1x8x1xf32>,
    %56 = arith.mulf %50, %50 : vector<8x384xf32>
    %cst_36 = arith.constant dense<0.000000e+00> : vector<8xf32>
    %57 = vector.multi_reduction <add>, %56, %cst_36 [1] : vector<8x384xf32> to vector<8xf32>
    %58 = vector.shape_cast %57 : vector<8xf32> to vector<8x1xf32>
    %c0_37 = arith.constant 0 : index
    %c0_38 = arith.constant 0 : index
    %c0_39 = arith.constant 0 : index
    %59 = vector.load %arg5[%c0_37, %c0_38, %c0_39] : memref<1x8x1xf32, #tpu.memory_space<vmem>>, vector<1x8x1xf32>
    %60 = vector.shape_cast %59 : vector<1x8x1xf32> to vector<8x1xf32>
    %61 = vector.shape_cast %58 : vector<8x1xf32> to vector<1x8x1xf32>
    tpu.vector_store %arg5[%c0_37, %c0_38, %c0_39], %61 {strides = array<i32>} : memref<1x8x1xf32, #tpu.memory_space<vmem>>, vector<1x8x1xf32>,
    return
  }
  func.func @transform_0(%arg0: i32) -> (i32, i32, i32) {
    %c0_i32 = arith.constant 0 : i32
    %c0_i32_0 = arith.constant 0 : i32
    %c0_i32_1 = arith.constant 0 : i32
    %c0_i32_2 = arith.constant 0 : i32
    return %c0_i32, %c0_i32_0, %c0_i32_1 : i32, i32, i32
  }
  func.func @transform_1(%arg0: i32) -> (i32, i32, i32) {
    %c0_i32 = arith.constant 0 : i32
    %c0_i32_0 = arith.constant 0 : i32
    %c0_i32_1 = arith.constant 0 : i32
    return %arg0, %c0_i32, %c0_i32_0 : i32, i32, i32
  }
  func.func @transform_2(%arg0: i32) -> (i32, i32) {
    %c0_i32 = arith.constant 0 : i32
    %c0_i32_0 = arith.constant 0 : i32
    %c0_i32_1 = arith.constant 0 : i32
    return %c0_i32, %c0_i32_0 : i32, i32
  }
  func.func @transform_3(%arg0: i32) -> (i32, i32, i32) {
    %c0_i32 = arith.constant 0 : i32
    %c0_i32_0 = arith.constant 0 : i32
    %c0_i32_1 = arith.constant 0 : i32
    return %arg0, %c0_i32, %c0_i32_0 : i32, i32, i32
  }
  func.func @transform_4(%arg0: i32) -> (i32, i32, i32) {
    %c0_i32 = arith.constant 0 : i32
    %c0_i32_0 = arith.constant 0 : i32
    %c0_i32_1 = arith.constant 0 : i32
    return %arg0, %c0_i32, %c0_i32_0 : i32, i32, i32
  }
}

module attributes {stable_mosaic.version = 11 : i64} {
  func.func @_apply_kernel(%arg0: i32, %arg1: memref<9x8x8xbf16, #tpu.memory_space<vmem>>, %arg2: memref<1x8x512xbf16, #tpu.memory_space<vmem>>, %arg3: memref<8x1xf32, #tpu.memory_space<vmem>>, %arg4: memref<8x1xf32, #tpu.memory_space<vmem>>, %arg5: memref<1x8x384xf32, #tpu.memory_space<vmem>>) attributes {dimension_semantics = [#tpu.dimension_semantics<parallel>], iteration_bounds = array<i64: 2>, scalar_prefetch = 0 : i64, scratch_operands = 0 : i64, tpu.core_type = #tpu.core_type<tc>, window_params = [{pipeline_mode = #tpu.pipeline_mode<synchronous>, transform_indices = @transform_0, window_bounds = array<i64: 9, 8, 8>}, {transform_indices = @transform_1, window_bounds = array<i64: 1, 8, 512>}, {pipeline_mode = #tpu.pipeline_mode<synchronous>, transform_indices = @transform_2, window_bounds = array<i64: 8, 1>}, {pipeline_mode = #tpu.pipeline_mode<synchronous>, transform_indices = @transform_3, window_bounds = array<i64: 8, 1>}, {transform_indices = @transform_4, window_bounds = array<i64: 1, 8, 384>}]} {
    %c0 = arith.constant 0 : index
    %c0_0 = arith.constant 0 : index
    %c0_1 = arith.constant 0 : index
    %0 = vector.load %arg2[%c0, %c0_0, %c0_1] : memref<1x8x512xbf16, #tpu.memory_space<vmem>>, vector<1x8x512xbf16>
    %1 = vector.shape_cast %0 : vector<1x8x512xbf16> to vector<8x512xbf16>
    %cst = arith.constant 0.000000e+00 : f32
    %2 = vector.broadcast %cst : f32 to vector<8x384xf32>
    %c0_2 = arith.constant 0 : index
    %c0_3 = arith.constant 0 : index
    %c0_4 = arith.constant 0 : index
    %3 = vector.load %arg1[%c0_2, %c0_3, %c0_4] : memref<9x8x8xbf16, #tpu.memory_space<vmem>>, vector<1x8x8xbf16>
    %4 = vector.shape_cast %3 : vector<1x8x8xbf16> to vector<8x8xbf16>
    %5 = vector.extract_strided_slice %1 {offsets = [0, 0], sizes = [8, 384], strides = [1, 1]} : vector<8x512xbf16> to vector<8x384xbf16>
    %cst_5 = arith.constant dense<0.000000e+00> : vector<8x384xf32>
    %6 = tpu.matmul %4, %5, %cst_5 {dimension_numbers = #tpu.dot_dimension_numbers<[1], [0], [0], [1], [0, 0, 1, 1], [], []>} : vector<8x8xbf16>, vector<8x384xbf16>, vector<8x384xf32> -> vector<8x384xf32>
    %7 = arith.addf %2, %6 : vector<8x384xf32>
    %c1 = arith.constant 1 : index
    %c0_6 = arith.constant 0 : index
    %c0_7 = arith.constant 0 : index
    %8 = vector.load %arg1[%c1, %c0_6, %c0_7] : memref<9x8x8xbf16, #tpu.memory_space<vmem>>, vector<1x8x8xbf16>
    %9 = vector.shape_cast %8 : vector<1x8x8xbf16> to vector<8x8xbf16>
    %10 = vector.extract_strided_slice %1 {offsets = [0, 2], sizes = [8, 384], strides = [1, 1]} : vector<8x512xbf16> to vector<8x384xbf16>
    %cst_8 = arith.constant dense<0.000000e+00> : vector<8x384xf32>
    %11 = tpu.matmul %9, %10, %cst_8 {dimension_numbers = #tpu.dot_dimension_numbers<[1], [0], [0], [1], [0, 0, 1, 1], [], []>} : vector<8x8xbf16>, vector<8x384xbf16>, vector<8x384xf32> -> vector<8x384xf32>
    %12 = arith.addf %7, %11 : vector<8x384xf32>
    %c2 = arith.constant 2 : index
    %c0_9 = arith.constant 0 : index
    %c0_10 = arith.constant 0 : index
    %13 = vector.load %arg1[%c2, %c0_9, %c0_10] : memref<9x8x8xbf16, #tpu.memory_space<vmem>>, vector<1x8x8xbf16>
    %14 = vector.shape_cast %13 : vector<1x8x8xbf16> to vector<8x8xbf16>
    %15 = vector.extract_strided_slice %1 {offsets = [0, 4], sizes = [8, 384], strides = [1, 1]} : vector<8x512xbf16> to vector<8x384xbf16>
    %cst_11 = arith.constant dense<0.000000e+00> : vector<8x384xf32>
    %16 = tpu.matmul %14, %15, %cst_11 {dimension_numbers = #tpu.dot_dimension_numbers<[1], [0], [0], [1], [0, 0, 1, 1], [], []>} : vector<8x8xbf16>, vector<8x384xbf16>, vector<8x384xf32> -> vector<8x384xf32>
    %17 = arith.addf %12, %16 : vector<8x384xf32>
    %c3 = arith.constant 3 : index
    %c0_12 = arith.constant 0 : index
    %c0_13 = arith.constant 0 : index
    %18 = vector.load %arg1[%c3, %c0_12, %c0_13] : memref<9x8x8xbf16, #tpu.memory_space<vmem>>, vector<1x8x8xbf16>
    %19 = vector.shape_cast %18 : vector<1x8x8xbf16> to vector<8x8xbf16>
    %20 = vector.extract_strided_slice %1 {offsets = [0, 40], sizes = [8, 384], strides = [1, 1]} : vector<8x512xbf16> to vector<8x384xbf16>
    %cst_14 = arith.constant dense<0.000000e+00> : vector<8x384xf32>
    %21 = tpu.matmul %19, %20, %cst_14 {dimension_numbers = #tpu.dot_dimension_numbers<[1], [0], [0], [1], [0, 0, 1, 1], [], []>} : vector<8x8xbf16>, vector<8x384xbf16>, vector<8x384xf32> -> vector<8x384xf32>
    %22 = arith.addf %17, %21 : vector<8x384xf32>
    %c4 = arith.constant 4 : index
    %c0_15 = arith.constant 0 : index
    %c0_16 = arith.constant 0 : index
    %23 = vector.load %arg1[%c4, %c0_15, %c0_16] : memref<9x8x8xbf16, #tpu.memory_space<vmem>>, vector<1x8x8xbf16>
    %24 = vector.shape_cast %23 : vector<1x8x8xbf16> to vector<8x8xbf16>
    %25 = vector.extract_strided_slice %1 {offsets = [0, 42], sizes = [8, 384], strides = [1, 1]} : vector<8x512xbf16> to vector<8x384xbf16>
    %cst_17 = arith.constant dense<0.000000e+00> : vector<8x384xf32>
    %26 = tpu.matmul %24, %25, %cst_17 {dimension_numbers = #tpu.dot_dimension_numbers<[1], [0], [0], [1], [0, 0, 1, 1], [], []>} : vector<8x8xbf16>, vector<8x384xbf16>, vector<8x384xf32> -> vector<8x384xf32>
    %27 = arith.addf %22, %26 : vector<8x384xf32>
    %c5 = arith.constant 5 : index
    %c0_18 = arith.constant 0 : index
    %c0_19 = arith.constant 0 : index
    %28 = vector.load %arg1[%c5, %c0_18, %c0_19] : memref<9x8x8xbf16, #tpu.memory_space<vmem>>, vector<1x8x8xbf16>
    %29 = vector.shape_cast %28 : vector<1x8x8xbf16> to vector<8x8xbf16>
    %30 = vector.extract_strided_slice %1 {offsets = [0, 44], sizes = [8, 384], strides = [1, 1]} : vector<8x512xbf16> to vector<8x384xbf16>
    %cst_20 = arith.constant dense<0.000000e+00> : vector<8x384xf32>
    %31 = tpu.matmul %29, %30, %cst_20 {dimension_numbers = #tpu.dot_dimension_numbers<[1], [0], [0], [1], [0, 0, 1, 1], [], []>} : vector<8x8xbf16>, vector<8x384xbf16>, vector<8x384xf32> -> vector<8x384xf32>
    %32 = arith.addf %27, %31 : vector<8x384xf32>
    %c6 = arith.constant 6 : index
    %c0_21 = arith.constant 0 : index
    %c0_22 = arith.constant 0 : index
    %33 = vector.load %arg1[%c6, %c0_21, %c0_22] : memref<9x8x8xbf16, #tpu.memory_space<vmem>>, vector<1x8x8xbf16>
    %34 = vector.shape_cast %33 : vector<1x8x8xbf16> to vector<8x8xbf16>
    %35 = vector.extract_strided_slice %1 {offsets = [0, 80], sizes = [8, 384], strides = [1, 1]} : vector<8x512xbf16> to vector<8x384xbf16>
    %cst_23 = arith.constant dense<0.000000e+00> : vector<8x384xf32>
    %36 = tpu.matmul %34, %35, %cst_23 {dimension_numbers = #tpu.dot_dimension_numbers<[1], [0], [0], [1], [0, 0, 1, 1], [], []>} : vector<8x8xbf16>, vector<8x384xbf16>, vector<8x384xf32> -> vector<8x384xf32>
    %37 = arith.addf %32, %36 : vector<8x384xf32>
    %c7 = arith.constant 7 : index
    %c0_24 = arith.constant 0 : index
    %c0_25 = arith.constant 0 : index
    %38 = vector.load %arg1[%c7, %c0_24, %c0_25] : memref<9x8x8xbf16, #tpu.memory_space<vmem>>, vector<1x8x8xbf16>
    %39 = vector.shape_cast %38 : vector<1x8x8xbf16> to vector<8x8xbf16>
    %40 = vector.extract_strided_slice %1 {offsets = [0, 82], sizes = [8, 384], strides = [1, 1]} : vector<8x512xbf16> to vector<8x384xbf16>
    %cst_26 = arith.constant dense<0.000000e+00> : vector<8x384xf32>
    %41 = tpu.matmul %39, %40, %cst_26 {dimension_numbers = #tpu.dot_dimension_numbers<[1], [0], [0], [1], [0, 0, 1, 1], [], []>} : vector<8x8xbf16>, vector<8x384xbf16>, vector<8x384xf32> -> vector<8x384xf32>
    %42 = arith.addf %37, %41 : vector<8x384xf32>
    %c8 = arith.constant 8 : index
    %c0_27 = arith.constant 0 : index
    %c0_28 = arith.constant 0 : index
    %43 = vector.load %arg1[%c8, %c0_27, %c0_28] : memref<9x8x8xbf16, #tpu.memory_space<vmem>>, vector<1x8x8xbf16>
    %44 = vector.shape_cast %43 : vector<1x8x8xbf16> to vector<8x8xbf16>
    %45 = vector.extract_strided_slice %1 {offsets = [0, 84], sizes = [8, 384], strides = [1, 1]} : vector<8x512xbf16> to vector<8x384xbf16>
    %cst_29 = arith.constant dense<0.000000e+00> : vector<8x384xf32>
    %46 = tpu.matmul %44, %45, %cst_29 {dimension_numbers = #tpu.dot_dimension_numbers<[1], [0], [0], [1], [0, 0, 1, 1], [], []>} : vector<8x8xbf16>, vector<8x384xbf16>, vector<8x384xf32> -> vector<8x384xf32>
    %47 = arith.addf %42, %46 : vector<8x384xf32>
    %c0_30 = arith.constant 0 : index
    %c0_31 = arith.constant 0 : index
    %48 = vector.load %arg3[%c0_30, %c0_31] : memref<8x1xf32, #tpu.memory_space<vmem>>, vector<8x1xf32>
    %49 = vector.broadcast %48 : vector<8x1xf32> to vector<8x384xf32>
    %50 = arith.mulf %47, %49 : vector<8x384xf32>
    %c0_32 = arith.constant 0 : index
    %c0_33 = arith.constant 0 : index
    %51 = vector.load %arg4[%c0_32, %c0_33] : memref<8x1xf32, #tpu.memory_space<vmem>>, vector<8x1xf32>
    %52 = vector.broadcast %51 : vector<8x1xf32> to vector<8x384xf32>
    %53 = arith.addf %50, %52 : vector<8x384xf32>
    %c0_34 = arith.constant 0 : index
    %c0_35 = arith.constant 0 : index
    %c0_36 = arith.constant 0 : index
    %54 = vector.load %arg5[%c0_34, %c0_35, %c0_36] : memref<1x8x384xf32, #tpu.memory_space<vmem>>, vector<1x8x384xf32>
    %55 = vector.shape_cast %54 : vector<1x8x384xf32> to vector<8x384xf32>
    %56 = vector.shape_cast %53 : vector<8x384xf32> to vector<1x8x384xf32>
    tpu.vector_store %arg5[%c0_34, %c0_35, %c0_36], %56 {strides = array<i32>} : memref<1x8x384xf32, #tpu.memory_space<vmem>>, vector<1x8x384xf32>,
    return
  }
  func.func @transform_0(%arg0: i32) -> (i32, i32, i32) {
    %c0_i32 = arith.constant 0 : i32
    %c0_i32_0 = arith.constant 0 : i32
    %c0_i32_1 = arith.constant 0 : i32
    %c0_i32_2 = arith.constant 0 : i32
    return %c0_i32, %c0_i32_0, %c0_i32_1 : i32, i32, i32
  }
  func.func @transform_1(%arg0: i32) -> (i32, i32, i32) {
    %c0_i32 = arith.constant 0 : i32
    %c0_i32_0 = arith.constant 0 : i32
    %c0_i32_1 = arith.constant 0 : i32
    return %arg0, %c0_i32, %c0_i32_0 : i32, i32, i32
  }
  func.func @transform_2(%arg0: i32) -> (i32, i32) {
    %c0_i32 = arith.constant 0 : i32
    %c0_i32_0 = arith.constant 0 : i32
    %c0_i32_1 = arith.constant 0 : i32
    return %c0_i32, %c0_i32_0 : i32, i32
  }
  func.func @transform_3(%arg0: i32) -> (i32, i32) {
    %c0_i32 = arith.constant 0 : i32
    %c0_i32_0 = arith.constant 0 : i32
    %c0_i32_1 = arith.constant 0 : i32
    return %c0_i32, %c0_i32_0 : i32, i32
  }
  func.func @transform_4(%arg0: i32) -> (i32, i32, i32) {
    %c0_i32 = arith.constant 0 : i32
    %c0_i32_0 = arith.constant 0 : i32
    %c0_i32_1 = arith.constant 0 : i32
    return %arg0, %c0_i32, %c0_i32_0 : i32, i32, i32
  }
}

</mosaic_0001>

<bundles_post_ra>
// kernel: conv_forward.3
= control target key start
LH: loop header
LB: loop body
LE: loop exit
PB: predicated region body
PF: predicated region fallthrough
CT: control target
= control target key end

     0   :  { %s990_s15 = smov 0   ;;  %s1127_s0 = inlined_call_operand.vmem [shape: bf16[9,8,8], index: 0, kind: input, shape index: {}]   ;;  %s1128_s1 = inlined_call_operand.vmem [shape: bf16[2,8,512], index: 1, kind: input, shape index: {}]   ;;  %s1129_s2 = inlined_call_operand.vmem [shape: f32[8,1], index: 2, kind: input, shape index: {}]   ;;  %s1130_s3 = inlined_call_operand.vmem [shape: f32[8,1], index: 3, kind: input, shape index: {}]   ;;  %s1131_s4 = inlined_call_operand.vmem [shape: f32[2,8,384], index: 4, kind: output, shape index: {}]  }
   0x1 LB: > { %s882_s16 = sadd.s32 4294967295, %s954_s15   ;;  %p886_p0 = scmp.ge.s32.totalorder %s954_s15, 1  ;;  %s954_s15 = sphi %s990_s15, %s14_s15  }
   0x2   : > { %p162_p1 = scmp.lt.s32.totalorder %s954_s15, 3 }
   0x4   : > { %p163_p2 = pnand %p886_p0, %p162_p1 }
   0x5   : > { %p188_p3 = scmp.lt.s32.totalorder (!%p163_p2), %s882_s16, 1  ;;  %s956_s21 = smov (!%p163_p2), 126  }
   0x6   : > { %166 = sbr.rel (%p163_p2) target bundleno = 386 (0x182), region = 36  ;;  %s957_s22 = smov (!%p163_p2), 124  }
   0x7   : > { %s958_s23 = smov (!%p163_p2), 88   ;;  %s959_s24 = smov (!%p163_p2), 86  }
   0x8   : > { %s960_s25 = smov (!%p163_p2), 84   ;;  %s961_s26 = smov (!%p163_p2), 48  }
   0x9   : > { %s962_s27 = smov (!%p163_p2), 46   ;;  %s963_s28 = smov (!%p163_p2), 44  }
   0xb   : > { %s1133_s16 = smov (!%p188_p3, %s882_s16), 1  ;;  %vm230_vm0 = vcmask 1043456   ;;  %v201_v11 = vld [vmem:[%s1127_s0] sm:$0xf]  ;;  %vm226_vm1 = vcmask 64512   ;;  %vm340_vm2 = vcmask 1014784  }
   0xc   : > { %s927_s17 = sshll.u32 %s1133_s16, 4  ;;  %vm222_vm3 = vcmask 1031168   ;;  %v890_v30 = vld [vmem:[%s1127_s0 + $0x4] sm:$0xf]  ;;  %vm408_vm4 = vcmask 719872   ;;  %vm476_vm5 = vcmask 703488  }
   0xd   : > { %s192_s20 = scalar_lea.vmem %s1128_s1, %s927_s17  ;;  %v897_v40 = vld [vmem:[%s1127_s0 + $0x8] sm:$0xf]  ;;  %v901_v53 = vld [vmem:[%s1127_s0 + $0xc] sm:$0xf]  ;;  %vm544_vm6 = vcmask 687104   ;;  %vm612_vm7 = vcmask 392192  }
   0xe   : > { %v200_v0 = vld [vmem:[%s192_s20 + $0x8] sm:$0xff]  ;;  %v199_v1 = vld [vmem:[%s192_s20] sm:$0xff]  ;;  %vm680_vm8 = vcmask 375808   ;;  %vm748_vm9 = vcmask 359424  }
   0xf   : > { %v208_v2 = vunpack.c.l.b16 %v200_v0  ;;  %v206_v3 = vunpack.c.l.b16 %v199_v1  ;;  %v209_v6 = vunpack.c.h.b16 %v200_v0  ;;  %v207_v7 = vunpack.c.h.b16 %v199_v1 }
  0x11   : > { %v1004_v4 = vpack.c.b16 %v208_v2, %v208_v2  ;;  %v210_v5 = vpack.c.b16 %v206_v3, %v206_v3  ;;  %v213_v8 = vpack.c.b16 %v209_v6, %v209_v6  ;;  %v211_v9 = vpack.c.b16 %v207_v7, %v207_v7 }
  0x13   : > { %218 = vrot.lane.b32.xlu0 %v1004_v4, %s956_s21  ;;  %214 = vrot.lane.b32.xlu1 %v210_v5, %s956_s21  ;;  %v283_v10 = vsel %vm230_vm0, %v210_v5, 0  ;;  %v286_v25 = vsel %vm230_vm0, %v211_v9, 0  ;;  %v289_v29 = vsel %vm230_vm0, %v1004_v4, 0 }
  0x14   : > { %332 = vrot.lane.b32.xlu2 %v210_v5, %s957_s22  ;;  %298 = vmatpush.bf16.msra.mxu3 %v283_v10 }
  0x17   : > { %894 = vmatmul.msk.bf16.vlgmr.msra.gmra.mxu3 %vm226_vm1, %v201_v11 }
  0x1b   : > { %220 = vrot.lane.b32.xlu0 %v213_v8, %s956_s21  ;;  %216 = vrot.lane.b32.xlu1 %v211_v9, %s956_s21 }
  0x1c   : > { %334 = vrot.lane.b32.xlu2 %v211_v9, %s957_s22 }
  0x23   : > { %336 = vrot.lane.b32.xlu0 %v1004_v4, %s957_s22  ;;  %402 = vrot.lane.b32.xlu1 %v211_v9, %s958_s23 }
  0x24   : > { %404 = vrot.lane.b32.xlu2 %v1004_v4, %s958_s23 }
  0x2b   : > { %338 = vrot.lane.b32.xlu0 %v213_v8, %s957_s22  ;;  %400 = vrot.lane.b32.xlu1 %v210_v5, %s958_s23 }
  0x2c   : > { %406 = vrot.lane.b32.xlu2 %v213_v8, %s958_s23 }
  0x33   : > { %472 = vrot.lane.b32.xlu0 %v1004_v4, %s959_s24  ;;  %474 = vrot.lane.b32.xlu1 %v213_v8, %s959_s24 }
  0x34   : > { %468 = vrot.lane.b32.xlu2 %v210_v5, %s959_s24 }
  0x3b   : > { %470 = vrot.lane.b32.xlu0 %v211_v9, %s959_s24  ;;  %536 = vrot.lane.b32.xlu1 %v210_v5, %s960_s25 }
  0x3c   : > { %538 = vrot.lane.b32.xlu2 %v211_v9, %s960_s25 }
  0x43   : > { %604 = vrot.lane.b32.xlu0 %v210_v5, %s961_s26  ;;  %606 = vrot.lane.b32.xlu1 %v211_v9, %s961_s26 }
  0x44   : > { %540 = vrot.lane.b32.xlu2 %v1004_v4, %s960_s25 }
  0x4b   : > { %542 = vrot.lane.b32.xlu0 %v213_v8, %s960_s25  ;;  %608 = vrot.lane.b32.xlu1 %v1004_v4, %s961_s26 }
  0x4c   : > { %674 = vrot.lane.b32.xlu2 %v211_v9, %s962_s27 }
  0x53   : > { %676 = vrot.lane.b32.xlu0 %v1004_v4, %s962_s27  ;;  %610 = vrot.lane.b32.xlu1 %v213_v8, %s961_s26 }
  0x54   : > { %672 = vrot.lane.b32.xlu2 %v210_v5, %s962_s27 }
  0x5b   : > { %678 = vrot.lane.b32.xlu0 %v213_v8, %s962_s27  ;;  %744 = vrot.lane.b32.xlu1 %v1004_v4, %s963_s28  ;;  %s928_s27 = smul.u32 24, %s1133_s16 }
  0x5c   : > { %746 = vrot.lane.b32.xlu2 %v213_v8, %s963_s28 }
  0x5d   : > { %s197_s30 = scalar_lea.vmem %s1131_s4, %s928_s27 }
  0x63   : > { %742 = vrot.lane.b32.xlu1 %v211_v9, %s963_s28  ;;  %740 = vrot.lane.b32.xlu0 %v210_v5, %s963_s28  ;;  %v909_v5 = vld [vmem:[%s1127_s0 + $0x14] sm:$0xf] }
  0x6e   : > { %v333_v12 = vpop.permute.xlu2 %332 }
  0x76   : > { %v335_v13 = vpop.permute.xlu2 %334 }
  0x77   : > { %v341_v17 = vsel %vm340_vm2, %v333_v12, %v335_v13 }
  0x78   : > { %v348_v21 = vsel %vm230_vm0, %v341_v17, 0 }
  0x7e   : > { %v405_v14 = vpop.permute.xlu2 %404 }
  0x85   : > { %v219_v15 = vpop.permute.xlu0 %218  ;;  %v215_v16 = vpop.permute.xlu1 %214 }
  0x86   : > { %v407_v18 = vpop.permute.xlu2 %406 }
  0x87   : > { %v411_v31 = vsel %vm408_vm4, %v405_v14, %v407_v18 }
  0x88   : > { %v422_v37 = vsel %vm230_vm0, %v411_v31, 0 }
  0x8d   : > { %v221_v19 = vpop.permute.xlu0 %220  ;;  %v217_v20 = vpop.permute.xlu1 %216 }
  0x8e   : > { %v223_v22 = vsel %vm222_vm3, %v215_v16, %v217_v20  ;;  %v224_v23 = vsel %vm222_vm3, %v217_v20, %v219_v15  ;;  %v225_v24 = vsel %vm222_vm3, %v219_v15, %v221_v19  ;;  %v469_v32 = vpop.permute.xlu2 %468 }
  0x8f   : > { %v232_v26 = vsel %vm230_vm0, %v223_v22, 0  ;;  %v235_v27 = vsel %vm230_vm0, %v224_v23, 0  ;;  %v238_v28 = vsel %vm230_vm0, %v225_v24, 0  ;;  %v913_v22 = vld [vmem:[%s1127_s0 + $0x18] sm:$0xf] }
  0x90   : > { %247 = vmatpush.bf16.msra.mxu0 %v232_v26  ;;  %260 = vmatpush.bf16.msra.mxu1 %v235_v27 }
  0x91   : > { %273 = vmatpush.bf16.msra.mxu2 %v238_v28 }
  0x93   : > { %891 = vmatmul.msk.bf16.vlgmr.msra.gmra.mxu0 %vm226_vm1, %v890_v30  ;;  %892 = vmatmul.msk.bf16.vlgmr.msra.gmra.mxu1 %vm226_vm1, %v890_v30 }
  0x94   : > { %311 = vmatpush.bf16.msrb.mxu0 %v286_v25  ;;  %324 = vmatpush.bf16.msrb.mxu1 %v289_v29 }
  0x95   : > { %363 = vmatpush.bf16.msrb.mxu2 %v348_v21  ;;  %v337_v33 = vpop.permute.xlu0 %336  ;;  %v403_v34 = vpop.permute.xlu1 %402 }
  0x96   : > { %893 = vmatmul.msk.bf16.vlgmr.msra.gmra.mxu2 %vm226_vm1, %v890_v30  ;;  %v410_v35 = vsel %vm408_vm4, %v403_v34, %v405_v14  ;;  %v342_v36 = vsel %vm340_vm2, %v335_v13, %v337_v33  ;;  %v539_v47 = vpop.permute.xlu2 %538  ;;  %v905_v14 = vld [vmem:[%s1127_s0 + $0x10] sm:$0xf]  ;;  %v815_v30 = vld [vmem:[%s1130_s3] sm:$0xff] }
  0x97   : > { %v419_v38 = vsel %vm230_vm0, %v410_v35, 0  ;;  %v351_v39 = vsel %vm230_vm0, %v342_v36, 0 }
  0x98   : > { %376 = vmatpush.bf16.msrb.mxu3 %v351_v39  ;;  %v921_v39 = vld [vmem:[%s1127_s0 + $0x20] sm:$0xf] }
  0x99   : > { %444 = vmatpush.bf16.msra.mxu2 %v419_v38  ;;  %v917_v38 = vld [vmem:[%s1127_s0 + $0x1c] sm:$0xf] }
  0x9b   : > { %899 = vmatmul.msk.bf16.vlgmr.msrb.gmra.mxu3 %vm226_vm1, %v897_v40 }
  0x9c   : > { %457 = vmatpush.bf16.msra.mxu3 %v422_v37 }
  0x9d   : > { %v339_v41 = vpop.permute.xlu0 %338  ;;  %v401_v42 = vpop.permute.xlu1 %400 }
  0x9e   : > { %v343_v43 = vsel %vm340_vm2, %v337_v33, %v339_v41  ;;  %v409_v44 = vsel %vm408_vm4, %v401_v42, %v403_v34  ;;  %v541_v52 = vpop.permute.xlu2 %540  ;;  %v964_v33 = vmov 0   ;;  %v806_v41 = vld [vmem:[%s1129_s2] sm:$0xff] }
  0x9f   : > { %v354_v45 = vsel %vm230_vm0, %v343_v43, 0  ;;  %v416_v46 = vsel %vm230_vm0, %v409_v44, 0  ;;  %v546_v59 = vsel %vm544_vm6, %v539_v47, %v541_v52  ;;  %947 = vset.pattern.permute.xlu0 %v964_v33  ;;  %946 = vset.pattern.permute.xlu2 %v964_v33 }
  0xa0   : > { %389 = vmatpush.bf16.msra.mxu0 %v354_v45  ;;  %431 = vmatpush.bf16.msra.mxu1 %v416_v46  ;;  %v555_v63 = vsel %vm230_vm0, %v546_v59, 0 }
  0xa1   : > { %818 = vperm.xlu0 %947, %v815_v30   ;;  %809 = vperm.xlu2 %946, %v806_v41  }
  0xa3   : > { %895 = vmatmul.msk.bf16.vlgmr.msrb.gmra.mxu0 %vm226_vm1, %v201_v11  ;;  %896 = vmatmul.msk.bf16.vlgmr.msrb.gmra.mxu1 %vm226_vm1, %v201_v11 }
  0xa5   : > { %v473_v48 = vpop.permute.xlu0 %472  ;;  %v475_v49 = vpop.permute.xlu1 %474 }
  0xa6   : > { %898 = vmatmul.msk.bf16.vlgmr.msrb.gmra.mxu2 %vm226_vm1, %v897_v40  ;;  %v479_v50 = vsel %vm476_vm5, %v473_v48, %v475_v49  ;;  %v675_v0 = vpop.permute.xlu2 %674 }
  0xa7   : > { %v490_v51 = vsel %vm230_vm0, %v479_v50, 0 }
  0xa8   : > { %525 = vmatpush.bf16.msrb.mxu2 %v490_v51 }
  0xab   : > { %904 = vmatmul.msk.bf16.vlgmr.msra.gmra.mxu3 %vm226_vm1, %v901_v53 }
  0xad   : > { %v471_v54 = vpop.permute.xlu0 %470  ;;  %v537_v55 = vpop.permute.xlu1 %536 }
  0xae   : > { %v478_v56 = vsel %vm476_vm5, %v471_v54, %v473_v48  ;;  %v477_v57 = vsel %vm476_vm5, %v469_v32, %v471_v54  ;;  %v545_v58 = vsel %vm544_vm6, %v537_v55, %v539_v47  ;;  %v673_v6 = vpop.permute.xlu2 %672 }
  0xaf   : > { %v487_v60 = vsel %vm230_vm0, %v478_v56, 0  ;;  %v484_v61 = vsel %vm230_vm0, %v477_v57, 0  ;;  %v552_v62 = vsel %vm230_vm0, %v545_v58, 0  ;;  %v681_v11 = vsel %vm680_vm8, %v673_v6, %v675_v0 }
  0xb0   : > { %512 = vmatpush.bf16.msrb.mxu1 %v487_v60  ;;  %499 = vmatpush.bf16.msrb.mxu0 %v484_v61  ;;  %v688_v15 = vsel %vm230_vm0, %v681_v11, 0 }
  0xb1   : > { %567 = vmatpush.bf16.msrb.mxu3 %v552_v62 }
  0xb3   : > { %900 = vmatmul.msk.bf16.vlgmr.msra.gmra.mxu0 %vm226_vm1, %v897_v40  ;;  %902 = vmatmul.msk.bf16.vlgmr.msra.gmra.mxu1 %vm226_vm1, %v901_v53  ;;  %v300_v40 = vpop.f32.mrf.mxu3 }
  0xb4   : > { %580 = vmatpush.bf16.msra.mxu0 %v555_v63 }
  0xb5   : > { %v605_v1 = vpop.permute.xlu0 %604  ;;  %v607_v2 = vpop.permute.xlu1 %606 }
  0xb6   : > { %903 = vmatmul.msk.bf16.vlgmr.msra.gmra.mxu2 %vm226_vm1, %v901_v53  ;;  %v613_v3 = vsel %vm612_vm7, %v605_v1, %v607_v2  ;;  %v747_v23 = vpop.permute.xlu2 %746 }
  0xb7   : > { %v620_v4 = vsel %vm230_vm0, %v613_v3, 0 }
  0xb8   : > { %635 = vmatpush.bf16.msra.mxu2 %v620_v4 }
  0xbb   : > { %910 = vmatmul.msk.bf16.vlgmr.msrb.gmra.mxu3 %vm226_vm1, %v909_v5  ;;  %v302_v42 = vpop.f32.mrf.mxu3 }
  0xbd   : > { %v543_v7 = vpop.permute.xlu0 %542  ;;  %v609_v8 = vpop.permute.xlu1 %608 }
  0xbe   : > { %v547_v9 = vsel %vm544_vm6, %v541_v52, %v543_v7  ;;  %v614_v10 = vsel %vm612_vm7, %v607_v2, %v609_v8 }
  0xbf   : > { %v558_v12 = vsel %vm230_vm0, %v547_v9, 0  ;;  %v623_v13 = vsel %vm230_vm0, %v614_v10, 0 }
  0xc0   : > { %648 = vmatpush.bf16.msra.mxu3 %v623_v13  ;;  %593 = vmatpush.bf16.msra.mxu1 %v558_v12 }
  0xc3   : > { %906 = vmatmul.msk.bf16.vlgmr.msrb.gmra.mxu0 %vm226_vm1, %v905_v14  ;;  %907 = vmatmul.msk.bf16.vlgmr.msrb.gmra.mxu1 %vm226_vm1, %v905_v14 }
  0xc4   : > { %703 = vmatpush.bf16.msrb.mxu1 %v688_v15 }
  0xc5   : > { %v677_v16 = vpop.permute.xlu0 %676  ;;  %v611_v17 = vpop.permute.xlu1 %610 }
  0xc6   : > { %908 = vmatmul.msk.bf16.vlgmr.msrb.gmra.mxu2 %vm226_vm1, %v905_v14  ;;  %v682_v18 = vsel %vm680_vm8, %v675_v0, %v677_v16  ;;  %v615_v19 = vsel %vm612_vm7, %v609_v8, %v611_v17 }
  0xc7   : > { %v691_v20 = vsel %vm230_vm0, %v682_v18, 0  ;;  %v626_v21 = vsel %vm230_vm0, %v615_v19, 0 }
  0xc8   : > { %661 = vmatpush.bf16.msrb.mxu0 %v626_v21  ;;  %716 = vmatpush.bf16.msrb.mxu2 %v691_v20 }
  0xcb   : > { %915 = vmatmul.msk.bf16.vlgmr.msra.gmra.mxu3 %vm226_vm1, %v913_v22 }
  0xcd   : > { %v679_v24 = vpop.permute.xlu0 %678  ;;  %v745_v25 = vpop.permute.xlu1 %744 }
  0xce   : > { %v683_v26 = vsel %vm680_vm8, %v677_v16, %v679_v24  ;;  %v751_v28 = vsel %vm748_vm9, %v745_v25, %v747_v23 }
  0xcf   : > { %v694_v27 = vsel %vm230_vm0, %v683_v26, 0  ;;  %v762_v29 = vsel %vm230_vm0, %v751_v28, 0 }
  0xd0   : > { %729 = vmatpush.bf16.msrb.mxu3 %v694_v27 }
  0xd3   : > { %911 = vmatmul.msk.bf16.vlgmr.msra.gmra.mxu0 %vm226_vm1, %v909_v5  ;;  %912 = vmatmul.msk.bf16.vlgmr.msra.gmra.mxu1 %vm226_vm1, %v909_v5 }
  0xd5   : > { %v743_v31 = vpop.permute.xlu1 %742  ;;  %v741_v32 = vpop.permute.xlu0 %740 }
  0xd6   : > { %914 = vmatmul.msk.bf16.vlgmr.msra.gmra.mxu2 %vm226_vm1, %v913_v22  ;;  %v750_v34 = vsel %vm748_vm9, %v743_v31, %v745_v25  ;;  %v749_v35 = vsel %vm748_vm9, %v741_v32, %v743_v31 }
  0xd7   : > { %797 = vmatpush.bf16.msra.mxu2 %v762_v29  ;;  %v759_v36 = vsel %vm230_vm0, %v750_v34, 0  ;;  %v756_v37 = vsel %vm230_vm0, %v749_v35, 0 }
  0xd8   : > { %784 = vmatpush.bf16.msra.mxu1 %v759_v36  ;;  %771 = vmatpush.bf16.msra.mxu0 %v756_v37 }
  0xdb   : > { %920 = vmatmul.msk.bf16.vlgmr.msrb.gmra.mxu3 %vm226_vm1, %v917_v38 }
  0xe3   : > { %916 = vmatmul.msk.bf16.vlgmr.msrb.gmra.mxu0 %vm226_vm1, %v913_v22  ;;  %918 = vmatmul.msk.bf16.vlgmr.msrb.gmra.mxu1 %vm226_vm1, %v917_v38 }
  0xe6   : > { %919 = vmatmul.msk.bf16.vlgmr.msrb.gmra.mxu2 %vm226_vm1, %v917_v38 }
  0xf3   : > { %922 = vmatmul.msk.bf16.vlgmr.msra.gmra.mxu0 %vm226_vm1, %v921_v39  ;;  %923 = vmatmul.msk.bf16.vlgmr.msra.gmra.mxu1 %vm226_vm1, %v921_v39 }
  0xf6   : > { %924 = vmatmul.msk.bf16.vlgmr.msra.gmra.mxu2 %vm226_vm1, %v921_v39 }
 0x110   : > { %v249_v43 = vpop.f32.mrf.mxu0  ;;  %v262_v44 = vpop.f32.mrf.mxu1 }
 0x111   : > { %v301_v45 = vadd.f32 %v300_v40, %v249_v43  ;;  %v810_v43 = vpop.permute.xlu2 %809 }
 0x118   : > { %v251_v47 = vpop.f32.mrf.mxu0  ;;  %v264_v48 = vpop.f32.mrf.mxu1 }
 0x119   : > { %v275_v46 = vpop.f32.mrf.mxu2 }
 0x11e   : > { %v378_v49 = vpop.f32.mrf.mxu3 }
 0x120   : > { %v313_v51 = vpop.f32.mrf.mxu0  ;;  %v326_v52 = vpop.f32.mrf.mxu1 }
 0x121   : > { %v277_v50 = vpop.f32.mrf.mxu2  ;;  %v314_v53 = vadd.f32 %v313_v51, %v262_v44  ;;  %v327_v54 = vadd.f32 %v326_v52, %v275_v46 }
 0x122   : > { %v819_v50 = vpop.permute.xlu0 %818 }
 0x123   : > { %v396_v55 = vadd.f32 %v378_v49, %v314_v53 }
 0x126   : > { %v380_v56 = vpop.f32.mrf.mxu3 }
 0x128   : > { %v315_v58 = vpop.f32.mrf.mxu0  ;;  %v328_v59 = vpop.f32.mrf.mxu1 }
 0x129   : > { %v365_v57 = vpop.f32.mrf.mxu2 }
 0x12a   : > { %v395_v24 = vadd.f32 %v365_v57, %v301_v45 }
 0x12e   : > { %v459_v60 = vpop.f32.mrf.mxu3 }
 0x130   : > { %v391_v62 = vpop.f32.mrf.mxu0  ;;  %v433_v63 = vpop.f32.mrf.mxu1 }
 0x131   : > { %v367_v61 = vpop.f32.mrf.mxu2  ;;  %v463_v25 = vadd.f32 %v433_v63, %v395_v24  ;;  %v397_v31 = vadd.f32 %v391_v62, %v327_v54 }
 0x133   : > { %v465_v36 = vadd.f32 %v459_v60, %v397_v31 }
 0x136   : > { %v461_v0 = vpop.f32.mrf.mxu3 }
 0x138   : > { %v393_v2 = vpop.f32.mrf.mxu0  ;;  %v435_v3 = vpop.f32.mrf.mxu1 }
 0x139   : > { %v446_v1 = vpop.f32.mrf.mxu2 }
 0x13a   : > { %v464_v26 = vadd.f32 %v446_v1, %v396_v55 }
 0x13e   : > { %v569_v4 = vpop.f32.mrf.mxu3 }
 0x140   : > { %v501_v6 = vpop.f32.mrf.mxu0  ;;  %v514_v7 = vpop.f32.mrf.mxu1 }
 0x141   : > { %v448_v5 = vpop.f32.mrf.mxu2  ;;  %v531_v28 = vadd.f32 %v501_v6, %v463_v25  ;;  %v532_v29 = vadd.f32 %v514_v7, %v464_v26 }
 0x143   : > { %v599_v35 = vadd.f32 %v569_v4, %v531_v28 }
 0x146   : > { %v571_v8 = vpop.f32.mrf.mxu3 }
 0x148   : > { %v503_v10 = vpop.f32.mrf.mxu0  ;;  %v516_v11 = vpop.f32.mrf.mxu1 }
 0x149   : > { %v527_v9 = vpop.f32.mrf.mxu2 }
 0x14a   : > { %v533_v39 = vadd.f32 %v527_v9, %v465_v36 }
 0x14e   : > { %v650_v12 = vpop.f32.mrf.mxu3 }
 0x150   : > { %v582_v14 = vpop.f32.mrf.mxu0  ;;  %v595_v15 = vpop.f32.mrf.mxu1 }
 0x151   : > { %v529_v13 = vpop.f32.mrf.mxu2  ;;  %v600_v34 = vadd.f32 %v582_v14, %v532_v29  ;;  %v601_v44 = vadd.f32 %v595_v15, %v533_v39 }
 0x153   : > { %v668_v37 = vadd.f32 %v650_v12, %v600_v34 }
 0x156   : > { %v652_v16 = vpop.f32.mrf.mxu3 }
 0x158   : > { %v584_v18 = vpop.f32.mrf.mxu0  ;;  %v597_v19 = vpop.f32.mrf.mxu1 }
 0x159   : > { %v637_v17 = vpop.f32.mrf.mxu2 }
 0x15a   : > { %v667_v38 = vadd.f32 %v637_v17, %v599_v35 }
 0x15e   : > { %v731_v20 = vpop.f32.mrf.mxu3 }
 0x160   : > { %v663_v22 = vpop.f32.mrf.mxu0  ;;  %v705_v23 = vpop.f32.mrf.mxu1 }
 0x161   : > { %v639_v21 = vpop.f32.mrf.mxu2  ;;  %v735_v40 = vadd.f32 %v705_v23, %v667_v38  ;;  %v669_v49 = vadd.f32 %v663_v22, %v601_v44 }
 0x163   : > { %v737_v55 = vadd.f32 %v731_v20, %v669_v49 }
 0x166   : > { %v733_v27 = vpop.f32.mrf.mxu3 }
 0x168   : > { %v665_v32 = vpop.f32.mrf.mxu0  ;;  %v707_v33 = vpop.f32.mrf.mxu1 }
 0x169   : > { %v718_v30 = vpop.f32.mrf.mxu2 }
 0x16a   : > { %v736_v41 = vadd.f32 %v718_v30, %v668_v37 }
 0x170   : > { %v773_v45 = vpop.f32.mrf.mxu0  ;;  %v786_v46 = vpop.f32.mrf.mxu1 }
 0x171   : > { %v720_v42 = vpop.f32.mrf.mxu2  ;;  %v803_v47 = vadd.f32 %v773_v45, %v735_v40  ;;  %v804_v48 = vadd.f32 %v786_v46, %v736_v41 }
 0x173   : > { %v812_v51 = vmul.f32 %v810_v43, %v803_v47  ;;  %v813_v52 = vmul.f32 %v810_v43, %v804_v48 }
 0x175   : > { %v821_v53 = vadd.f32 %v819_v50, %v812_v51  ;;  %v822_v54 = vadd.f32 %v819_v50, %v813_v52 }
 0x177   : > { %824 = vst [vmem:[%s197_s30] sm:$0xff] %v821_v53 }
 0x178   : > { %825 = vst [vmem:[%s197_s30 + $0x8] sm:$0xff] %v822_v54  ;;  %v775_v58 = vpop.f32.mrf.mxu0  ;;  %v788_v59 = vpop.f32.mrf.mxu1 }
 0x179   : > { %v799_v56 = vpop.f32.mrf.mxu2 }
 0x17a   : > { %v805_v57 = vadd.f32 %v799_v56, %v737_v55 }
 0x17c   : > { %v814_v60 = vmul.f32 %v810_v43, %v805_v57 }
 0x17e   : > { %v823_v61 = vadd.f32 %v819_v50, %v814_v60 }
 0x180   : > { %826 = vst [vmem:[%s197_s30 + $0x10] sm:$0xff] %v823_v61 }
 0x181   : > { %v801_v62 = vpop.f32.mrf.mxu2 }
 0x182 PF: > { %s14_s15 = sadd.s32 1, %s954_s15  }
 0x183   : > { %p11_p4 = scmp.ge.s32.totalorder %s14_s15, 4  }
 0x185   :  { %13 = sbr.rel (!%p11_p4) target bundleno = 1 (0x1), region = 74 }

// kernel: conv_forward.2
= control target key start
LH: loop header
LB: loop body
LE: loop exit
PB: predicated region body
PF: predicated region fallthrough
CT: control target
= control target key end

     0   :  { %s1028_s15 = smov 0   ;;  %s1165_s0 = inlined_call_operand.vmem [shape: bf16[9,8,8], index: 0, kind: input, shape index: {}]   ;;  %s1166_s1 = inlined_call_operand.vmem [shape: bf16[2,8,512], index: 1, kind: input, shape index: {}]   ;;  %s1167_s2 = inlined_call_operand.vmem [shape: f32[1,384], index: 2, kind: input, shape index: {}]   ;;  %s1168_s3 = inlined_call_operand.vmem [shape: f32[2,8,1], index: 3, kind: output, shape index: {0}]   ;;  %s1169_s4 = inlined_call_operand.vmem [shape: f32[2,8,1], index: 4, kind: output, shape index: {1}]  }
   0x1 LB: > { %s924_s16 = sadd.s32 4294967295, %s993_s15   ;;  %p928_p0 = scmp.ge.s32.totalorder %s993_s15, 1  ;;  %s993_s15 = sphi %s1028_s15, %s15_s15  }
   0x2   : > { %p165_p1 = scmp.lt.s32.totalorder %s993_s15, 3 }
   0x4   : > { %p166_p2 = pnand %p928_p0, %p165_p1 }
   0x5   : > { %p194_p3 = scmp.lt.s32.totalorder (!%p166_p2), %s924_s16, 1  ;;  %s995_s21 = smov (!%p166_p2), 126  }
   0x6   : > { %169 = sbr.rel (%p166_p2) target bundleno = 503 (0x1f7), region = 32  ;;  %s996_s22 = smov (!%p166_p2), 124  }
   0x7   : > { %s997_s23 = smov (!%p166_p2), 88   ;;  %s998_s24 = smov (!%p166_p2), 86  }
   0x8   : > { %s999_s25 = smov (!%p166_p2), 84   ;;  %s1000_s26 = smov (!%p166_p2), 48  }
   0x9   : > { %s1001_s27 = smov (!%p166_p2), 46   ;;  %s1002_s28 = smov (!%p166_p2), 44  }
   0xb   : > { %s1171_s16 = smov (!%p194_p3, %s924_s16), 1  ;;  %vm239_vm0 = vcmask 1043456   ;;  %v210_v11 = vld [vmem:[%s1165_s0] sm:$0xf]  ;;  %vm235_vm1 = vcmask 64512   ;;  %vm349_vm2 = vcmask 1014784  }
   0xc   : > { %s970_s17 = sshll.u32 %s1171_s16, 4  ;;  %vm231_vm3 = vcmask 1031168   ;;  %v933_v30 = vld [vmem:[%s1165_s0 + $0x4] sm:$0xf]  ;;  %vm417_vm4 = vcmask 719872   ;;  %vm485_vm5 = vcmask 703488  }
   0xd   : > { %s198_s20 = scalar_lea.vmem %s1166_s1, %s970_s17  ;;  %v940_v40 = vld [vmem:[%s1165_s0 + $0x8] sm:$0xf]  ;;  %v944_v53 = vld [vmem:[%s1165_s0 + $0xc] sm:$0xf]  ;;  %vm553_vm6 = vcmask 687104   ;;  %vm621_vm7 = vcmask 392192  }
   0xe   : > { %v209_v0 = vld [vmem:[%s198_s20 + $0x8] sm:$0xff]  ;;  %v208_v1 = vld [vmem:[%s198_s20] sm:$0xff]  ;;  %vm689_vm8 = vcmask 375808   ;;  %vm757_vm9 = vcmask 359424   ;;  %vm830_vm10 = vcmask 7168  }
   0xf   : > { %v217_v2 = vunpack.c.l.b16 %v209_v0  ;;  %v215_v3 = vunpack.c.l.b16 %v208_v1  ;;  %v218_v6 = vunpack.c.h.b16 %v209_v0  ;;  %v216_v7 = vunpack.c.h.b16 %v208_v1 }
  0x11   : > { %v1042_v4 = vpack.c.b16 %v217_v2, %v217_v2  ;;  %v219_v5 = vpack.c.b16 %v215_v3, %v215_v3  ;;  %v222_v8 = vpack.c.b16 %v218_v6, %v218_v6  ;;  %v220_v9 = vpack.c.b16 %v216_v7, %v216_v7 }
  0x13   : > { %227 = vrot.lane.b32.xlu0 %v1042_v4, %s995_s21  ;;  %223 = vrot.lane.b32.xlu1 %v219_v5, %s995_s21  ;;  %v292_v10 = vsel %vm239_vm0, %v219_v5, 0  ;;  %v295_v21 = vsel %vm239_vm0, %v220_v9, 0  ;;  %v298_v25 = vsel %vm239_vm0, %v1042_v4, 0 }
  0x14   : > { %341 = vrot.lane.b32.xlu2 %v219_v5, %s996_s22  ;;  %307 = vmatpush.bf16.msra.mxu3 %v292_v10 }
  0x17   : > { %937 = vmatmul.msk.bf16.vlgmr.msra.gmra.mxu3 %vm235_vm1, %v210_v11 }
  0x1b   : > { %229 = vrot.lane.b32.xlu0 %v222_v8, %s995_s21  ;;  %225 = vrot.lane.b32.xlu1 %v220_v9, %s995_s21 }
  0x1c   : > { %343 = vrot.lane.b32.xlu2 %v220_v9, %s996_s22 }
  0x23   : > { %345 = vrot.lane.b32.xlu0 %v1042_v4, %s996_s22  ;;  %411 = vrot.lane.b32.xlu1 %v220_v9, %s997_s23 }
  0x24   : > { %413 = vrot.lane.b32.xlu2 %v1042_v4, %s997_s23 }
  0x2b   : > { %347 = vrot.lane.b32.xlu0 %v222_v8, %s996_s22  ;;  %409 = vrot.lane.b32.xlu1 %v219_v5, %s997_s23 }
  0x2c   : > { %415 = vrot.lane.b32.xlu2 %v222_v8, %s997_s23 }
  0x33   : > { %481 = vrot.lane.b32.xlu0 %v1042_v4, %s998_s24  ;;  %483 = vrot.lane.b32.xlu1 %v222_v8, %s998_s24 }
  0x34   : > { %477 = vrot.lane.b32.xlu2 %v219_v5, %s998_s24 }
  0x3b   : > { %479 = vrot.lane.b32.xlu0 %v220_v9, %s998_s24  ;;  %545 = vrot.lane.b32.xlu1 %v219_v5, %s999_s25 }
  0x3c   : > { %547 = vrot.lane.b32.xlu2 %v220_v9, %s999_s25 }
  0x43   : > { %613 = vrot.lane.b32.xlu0 %v219_v5, %s1000_s26  ;;  %615 = vrot.lane.b32.xlu1 %v220_v9, %s1000_s26 }
  0x44   : > { %549 = vrot.lane.b32.xlu2 %v1042_v4, %s999_s25 }
  0x4b   : > { %551 = vrot.lane.b32.xlu0 %v222_v8, %s999_s25  ;;  %617 = vrot.lane.b32.xlu1 %v1042_v4, %s1000_s26  ;;  %s931_s25 = sshll.u32 %s1171_s16, 3 }
  0x4c   : > { %683 = vrot.lane.b32.xlu2 %v220_v9, %s1001_s27  ;;  %s206_s5 = scalar_lea.vmem %s1169_s4, %s931_s25 }
  0x53   : > { %685 = vrot.lane.b32.xlu0 %v1042_v4, %s1001_s27  ;;  %619 = vrot.lane.b32.xlu1 %v222_v8, %s1000_s26 }
  0x54   : > { %681 = vrot.lane.b32.xlu2 %v219_v5, %s1001_s27 }
  0x5b   : > { %687 = vrot.lane.b32.xlu0 %v222_v8, %s1001_s27  ;;  %753 = vrot.lane.b32.xlu1 %v1042_v4, %s1002_s28 }
  0x5c   : > { %755 = vrot.lane.b32.xlu2 %v222_v8, %s1002_s28 }
  0x63   : > { %751 = vrot.lane.b32.xlu1 %v220_v9, %s1002_s28  ;;  %749 = vrot.lane.b32.xlu0 %v219_v5, %s1002_s28  ;;  %v952_v5 = vld [vmem:[%s1165_s0 + $0x14] sm:$0xf]  ;;  %s202_s28 = scalar_lea.vmem %s1168_s3, %s931_s25 }
  0x6e   : > { %v342_v12 = vpop.permute.xlu2 %341 }
  0x76   : > { %v344_v13 = vpop.permute.xlu2 %343 }
  0x77   : > { %v350_v18 = vsel %vm349_vm2, %v342_v12, %v344_v13 }
  0x78   : > { %v357_v29 = vsel %vm239_vm0, %v350_v18, 0 }
  0x7e   : > { %v414_v14 = vpop.permute.xlu2 %413 }
  0x85   : > { %v228_v15 = vpop.permute.xlu0 %227  ;;  %v224_v16 = vpop.permute.xlu1 %223 }
  0x86   : > { %v416_v17 = vpop.permute.xlu2 %415 }
  0x87   : > { %v420_v31 = vsel %vm417_vm4, %v414_v14, %v416_v17 }
  0x88   : > { %v431_v37 = vsel %vm239_vm0, %v420_v31, 0 }
  0x8d   : > { %v230_v19 = vpop.permute.xlu0 %229  ;;  %v226_v20 = vpop.permute.xlu1 %225 }
  0x8e   : > { %v232_v22 = vsel %vm231_vm3, %v224_v16, %v226_v20  ;;  %v233_v23 = vsel %vm231_vm3, %v226_v20, %v228_v15  ;;  %v234_v24 = vsel %vm231_vm3, %v228_v15, %v230_v19  ;;  %v478_v32 = vpop.permute.xlu2 %477 }
  0x8f   : > { %v241_v26 = vsel %vm239_vm0, %v232_v22, 0  ;;  %v244_v27 = vsel %vm239_vm0, %v233_v23, 0  ;;  %v247_v28 = vsel %vm239_vm0, %v234_v24, 0  ;;  %v956_v22 = vld [vmem:[%s1165_s0 + $0x18] sm:$0xf] }
  0x90   : > { %256 = vmatpush.bf16.msra.mxu0 %v241_v26  ;;  %269 = vmatpush.bf16.msra.mxu1 %v244_v27 }
  0x91   : > { %282 = vmatpush.bf16.msra.mxu2 %v247_v28 }
  0x93   : > { %934 = vmatmul.msk.bf16.vlgmr.msra.gmra.mxu0 %vm235_vm1, %v933_v30  ;;  %935 = vmatmul.msk.bf16.vlgmr.msra.gmra.mxu1 %vm235_vm1, %v933_v30 }
  0x94   : > { %320 = vmatpush.bf16.msrb.mxu0 %v295_v21  ;;  %333 = vmatpush.bf16.msrb.mxu1 %v298_v25 }
  0x95   : > { %372 = vmatpush.bf16.msrb.mxu2 %v357_v29  ;;  %v346_v33 = vpop.permute.xlu0 %345  ;;  %v412_v34 = vpop.permute.xlu1 %411 }
  0x96   : > { %936 = vmatmul.msk.bf16.vlgmr.msra.gmra.mxu2 %vm235_vm1, %v933_v30  ;;  %v419_v35 = vsel %vm417_vm4, %v412_v34, %v414_v14  ;;  %v351_v36 = vsel %vm349_vm2, %v344_v13, %v346_v33  ;;  %v548_v47 = vpop.permute.xlu2 %547  ;;  %v948_v14 = vld [vmem:[%s1165_s0 + $0x10] sm:$0xf] }
  0x97   : > { %v428_v38 = vsel %vm239_vm0, %v419_v35, 0  ;;  %v360_v39 = vsel %vm239_vm0, %v351_v36, 0  ;;  %v960_v36 = vld [vmem:[%s1165_s0 + $0x1c] sm:$0xf] }
  0x98   : > { %385 = vmatpush.bf16.msrb.mxu3 %v360_v39 }
  0x99   : > { %453 = vmatpush.bf16.msra.mxu2 %v428_v38 }
  0x9a   : > { %v309_v38 = vpop.f32.mrf.mxu3 }
  0x9b   : > { %942 = vmatmul.msk.bf16.vlgmr.msrb.gmra.mxu3 %vm235_vm1, %v940_v40 }
  0x9c   : > { %466 = vmatpush.bf16.msra.mxu3 %v431_v37  ;;  %v964_v37 = vld [vmem:[%s1165_s0 + $0x20] sm:$0xf] }
  0x9d   : > { %v348_v41 = vpop.permute.xlu0 %347  ;;  %v410_v42 = vpop.permute.xlu1 %409 }
  0x9e   : > { %v352_v43 = vsel %vm349_vm2, %v346_v33, %v348_v41  ;;  %v418_v44 = vsel %vm417_vm4, %v410_v42, %v412_v34  ;;  %v550_v52 = vpop.permute.xlu2 %549 }
  0x9f   : > { %v363_v45 = vsel %vm239_vm0, %v352_v43, 0  ;;  %v425_v46 = vsel %vm239_vm0, %v418_v44, 0  ;;  %v555_v59 = vsel %vm553_vm6, %v548_v47, %v550_v52 }
  0xa0   : > { %398 = vmatpush.bf16.msra.mxu0 %v363_v45  ;;  %440 = vmatpush.bf16.msra.mxu1 %v425_v46  ;;  %v564_v63 = vsel %vm239_vm0, %v555_v59, 0 }
  0xa2   : > { %v311_v39 = vpop.f32.mrf.mxu3 }
  0xa3   : > { %938 = vmatmul.msk.bf16.vlgmr.msrb.gmra.mxu0 %vm235_vm1, %v210_v11  ;;  %939 = vmatmul.msk.bf16.vlgmr.msrb.gmra.mxu1 %vm235_vm1, %v210_v11 }
  0xa5   : > { %v482_v48 = vpop.permute.xlu0 %481  ;;  %v484_v49 = vpop.permute.xlu1 %483 }
  0xa6   : > { %941 = vmatmul.msk.bf16.vlgmr.msrb.gmra.mxu2 %vm235_vm1, %v940_v40  ;;  %v488_v50 = vsel %vm485_vm5, %v482_v48, %v484_v49  ;;  %v684_v0 = vpop.permute.xlu2 %683 }
  0xa7   : > { %v499_v51 = vsel %vm239_vm0, %v488_v50, 0 }
  0xa8   : > { %534 = vmatpush.bf16.msrb.mxu2 %v499_v51 }
  0xab   : > { %947 = vmatmul.msk.bf16.vlgmr.msra.gmra.mxu3 %vm235_vm1, %v944_v53 }
  0xad   : > { %v480_v54 = vpop.permute.xlu0 %479  ;;  %v546_v55 = vpop.permute.xlu1 %545 }
  0xae   : > { %v486_v56 = vsel %vm485_vm5, %v478_v32, %v480_v54  ;;  %v487_v57 = vsel %vm485_vm5, %v480_v54, %v482_v48  ;;  %v554_v58 = vsel %vm553_vm6, %v546_v55, %v548_v47  ;;  %v682_v6 = vpop.permute.xlu2 %681 }
  0xaf   : > { %v493_v60 = vsel %vm239_vm0, %v486_v56, 0  ;;  %v496_v61 = vsel %vm239_vm0, %v487_v57, 0  ;;  %v561_v62 = vsel %vm239_vm0, %v554_v58, 0  ;;  %v690_v11 = vsel %vm689_vm8, %v682_v6, %v684_v0 }
  0xb0   : > { %521 = vmatpush.bf16.msrb.mxu1 %v496_v61  ;;  %508 = vmatpush.bf16.msrb.mxu0 %v493_v60  ;;  %v697_v15 = vsel %vm239_vm0, %v690_v11, 0 }
  0xb1   : > { %576 = vmatpush.bf16.msrb.mxu3 %v561_v62 }
  0xb3   : > { %943 = vmatmul.msk.bf16.vlgmr.msra.gmra.mxu0 %vm235_vm1, %v940_v40  ;;  %945 = vmatmul.msk.bf16.vlgmr.msra.gmra.mxu1 %vm235_vm1, %v944_v53 }
  0xb4   : > { %589 = vmatpush.bf16.msra.mxu0 %v564_v63 }
  0xb5   : > { %v614_v1 = vpop.permute.xlu0 %613  ;;  %v616_v2 = vpop.permute.xlu1 %615 }
  0xb6   : > { %946 = vmatmul.msk.bf16.vlgmr.msra.gmra.mxu2 %vm235_vm1, %v944_v53  ;;  %v622_v3 = vsel %vm621_vm7, %v614_v1, %v616_v2  ;;  %v756_v23 = vpop.permute.xlu2 %755 }
  0xb7   : > { %v629_v4 = vsel %vm239_vm0, %v622_v3, 0 }
  0xb8   : > { %644 = vmatpush.bf16.msra.mxu2 %v629_v4 }
  0xbb   : > { %953 = vmatmul.msk.bf16.vlgmr.msrb.gmra.mxu3 %vm235_vm1, %v952_v5 }
  0xbd   : > { %v552_v7 = vpop.permute.xlu0 %551  ;;  %v618_v8 = vpop.permute.xlu1 %617 }
  0xbe   : > { %v556_v9 = vsel %vm553_vm6, %v550_v52, %v552_v7  ;;  %v623_v10 = vsel %vm621_vm7, %v616_v2, %v618_v8 }
  0xbf   : > { %v567_v12 = vsel %vm239_vm0, %v556_v9, 0  ;;  %v632_v13 = vsel %vm239_vm0, %v623_v10, 0 }
  0xc0   : > { %657 = vmatpush.bf16.msra.mxu3 %v632_v13  ;;  %602 = vmatpush.bf16.msra.mxu1 %v567_v12 }
  0xc3   : > { %949 = vmatmul.msk.bf16.vlgmr.msrb.gmra.mxu0 %vm235_vm1, %v948_v14  ;;  %950 = vmatmul.msk.bf16.vlgmr.msrb.gmra.mxu1 %vm235_vm1, %v948_v14 }
  0xc4   : > { %712 = vmatpush.bf16.msrb.mxu1 %v697_v15 }
  0xc5   : > { %v686_v16 = vpop.permute.xlu0 %685  ;;  %v620_v17 = vpop.permute.xlu1 %619 }
  0xc6   : > { %951 = vmatmul.msk.bf16.vlgmr.msrb.gmra.mxu2 %vm235_vm1, %v948_v14  ;;  %v691_v18 = vsel %vm689_vm8, %v684_v0, %v686_v16  ;;  %v624_v19 = vsel %vm621_vm7, %v618_v8, %v620_v17 }
  0xc7   : > { %v700_v20 = vsel %vm239_vm0, %v691_v18, 0  ;;  %v635_v21 = vsel %vm239_vm0, %v624_v19, 0 }
  0xc8   : > { %670 = vmatpush.bf16.msrb.mxu0 %v635_v21  ;;  %725 = vmatpush.bf16.msrb.mxu2 %v700_v20 }
  0xcb   : > { %958 = vmatmul.msk.bf16.vlgmr.msra.gmra.mxu3 %vm235_vm1, %v956_v22 }
  0xcd   : > { %v688_v24 = vpop.permute.xlu0 %687  ;;  %v754_v25 = vpop.permute.xlu1 %753 }
  0xce   : > { %v692_v26 = vsel %vm689_vm8, %v686_v16, %v688_v24  ;;  %v760_v28 = vsel %vm757_vm9, %v754_v25, %v756_v23 }
  0xcf   : > { %v703_v27 = vsel %vm239_vm0, %v692_v26, 0  ;;  %v771_v29 = vsel %vm239_vm0, %v760_v28, 0 }
  0xd0   : > { %738 = vmatpush.bf16.msrb.mxu3 %v703_v27 }
  0xd3   : > { %954 = vmatmul.msk.bf16.vlgmr.msra.gmra.mxu0 %vm235_vm1, %v952_v5  ;;  %955 = vmatmul.msk.bf16.vlgmr.msra.gmra.mxu1 %vm235_vm1, %v952_v5 }
  0xd5   : > { %v752_v30 = vpop.permute.xlu1 %751  ;;  %v750_v31 = vpop.permute.xlu0 %749 }
  0xd6   : > { %957 = vmatmul.msk.bf16.vlgmr.msra.gmra.mxu2 %vm235_vm1, %v956_v22  ;;  %v759_v32 = vsel %vm757_vm9, %v752_v30, %v754_v25  ;;  %v758_v33 = vsel %vm757_vm9, %v750_v31, %v752_v30 }
  0xd7   : > { %806 = vmatpush.bf16.msra.mxu2 %v771_v29  ;;  %v768_v34 = vsel %vm239_vm0, %v759_v32, 0  ;;  %v765_v35 = vsel %vm239_vm0, %v758_v33, 0 }
  0xd8   : > { %793 = vmatpush.bf16.msra.mxu1 %v768_v34  ;;  %780 = vmatpush.bf16.msra.mxu0 %v765_v35  ;;  %v815_v34 = vld [vmem:[%s1167_s2] sm:$0x7] }
  0xdb   : > { %963 = vmatmul.msk.bf16.vlgmr.msrb.gmra.mxu3 %vm235_vm1, %v960_v36 }
  0xe3   : > { %959 = vmatmul.msk.bf16.vlgmr.msrb.gmra.mxu0 %vm235_vm1, %v956_v22  ;;  %961 = vmatmul.msk.bf16.vlgmr.msrb.gmra.mxu1 %vm235_vm1, %v960_v36 }
  0xe6   : > { %962 = vmatmul.msk.bf16.vlgmr.msrb.gmra.mxu2 %vm235_vm1, %v960_v36 }
  0xf3   : > { %965 = vmatmul.msk.bf16.vlgmr.msra.gmra.mxu0 %vm235_vm1, %v964_v37  ;;  %966 = vmatmul.msk.bf16.vlgmr.msra.gmra.mxu1 %vm235_vm1, %v964_v37 }
  0xf6   : > { %967 = vmatmul.msk.bf16.vlgmr.msra.gmra.mxu2 %vm235_vm1, %v964_v37 }
 0x110   : > { %v258_v40 = vpop.f32.mrf.mxu0  ;;  %v271_v41 = vpop.f32.mrf.mxu1 }
 0x111   : > { %v310_v42 = vadd.f32 %v309_v38, %v258_v40 }
 0x118   : > { %v260_v44 = vpop.f32.mrf.mxu0  ;;  %v273_v45 = vpop.f32.mrf.mxu1 }
 0x119   : > { %v284_v43 = vpop.f32.mrf.mxu2 }
 0x11e   : > { %v387_v46 = vpop.f32.mrf.mxu3 }
 0x120   : > { %v322_v48 = vpop.f32.mrf.mxu0  ;;  %v335_v49 = vpop.f32.mrf.mxu1 }
 0x121   : > { %v286_v47 = vpop.f32.mrf.mxu2  ;;  %v323_v50 = vadd.f32 %v322_v48, %v271_v41  ;;  %v336_v51 = vadd.f32 %v335_v49, %v284_v43  ;;  %v817_v41 = vperm.slane %v815_v34, 0 }
 0x123   : > { %v405_v52 = vadd.f32 %v387_v46, %v323_v50 }
 0x126   : > { %v389_v53 = vpop.f32.mrf.mxu3 }
 0x128   : > { %v324_v56 = vpop.f32.mrf.mxu0  ;;  %v337_v57 = vpop.f32.mrf.mxu1 }
 0x129   : > { %v374_v54 = vpop.f32.mrf.mxu2 }
 0x12a   : > { %v404_v55 = vadd.f32 %v374_v54, %v310_v42  ;;  %v818_v42 = vperm.slane %v815_v34, 1 }
 0x12e   : > { %v468_v58 = vpop.f32.mrf.mxu3 }
 0x130   : > { %v400_v60 = vpop.f32.mrf.mxu0  ;;  %v442_v61 = vpop.f32.mrf.mxu1 }
 0x131   : > { %v376_v59 = vpop.f32.mrf.mxu2  ;;  %v472_v22 = vadd.f32 %v442_v61, %v404_v55  ;;  %v406_v28 = vadd.f32 %v400_v60, %v336_v51  ;;  %v819_v55 = vperm.slane %v815_v34, 2 }
 0x133   : > { %v474_v33 = vadd.f32 %v468_v58, %v406_v28 }
 0x136   : > { %v470_v62 = vpop.f32.mrf.mxu3 }
 0x138   : > { %v402_v0 = vpop.f32.mrf.mxu0  ;;  %v444_v1 = vpop.f32.mrf.mxu1 }
 0x139   : > { %v455_v63 = vpop.f32.mrf.mxu2 }
 0x13a   : > { %v473_v23 = vadd.f32 %v455_v63, %v405_v52 }
 0x13e   : > { %v578_v2 = vpop.f32.mrf.mxu3 }
 0x140   : > { %v510_v4 = vpop.f32.mrf.mxu0  ;;  %v523_v5 = vpop.f32.mrf.mxu1 }
 0x141   : > { %v457_v3 = vpop.f32.mrf.mxu2  ;;  %v540_v25 = vadd.f32 %v510_v4, %v472_v22  ;;  %v541_v26 = vadd.f32 %v523_v5, %v473_v23 }
 0x143   : > { %v608_v32 = vadd.f32 %v578_v2, %v540_v25 }
 0x146   : > { %v580_v6 = vpop.f32.mrf.mxu3 }
 0x148   : > { %v512_v8 = vpop.f32.mrf.mxu0  ;;  %v525_v9 = vpop.f32.mrf.mxu1 }
 0x149   : > { %v536_v7 = vpop.f32.mrf.mxu2 }
 0x14a   : > { %v542_v37 = vadd.f32 %v536_v7, %v474_v33 }
 0x14e   : > { %v659_v10 = vpop.f32.mrf.mxu3 }
 0x150   : > { %v591_v12 = vpop.f32.mrf.mxu0  ;;  %v604_v13 = vpop.f32.mrf.mxu1 }
 0x151   : > { %v538_v11 = vpop.f32.mrf.mxu2  ;;  %v609_v31 = vadd.f32 %v591_v12, %v541_v26  ;;  %v610_v43 = vadd.f32 %v604_v13, %v542_v37 }
 0x153   : > { %v677_v35 = vadd.f32 %v659_v10, %v609_v31 }
 0x156   : > { %v661_v14 = vpop.f32.mrf.mxu3 }
 0x158   : > { %v593_v16 = vpop.f32.mrf.mxu0  ;;  %v606_v17 = vpop.f32.mrf.mxu1 }
 0x159   : > { %v646_v15 = vpop.f32.mrf.mxu2 }
 0x15a   : > { %v676_v36 = vadd.f32 %v646_v15, %v608_v32 }
 0x15e   : > { %v740_v18 = vpop.f32.mrf.mxu3 }
 0x160   : > { %v672_v20 = vpop.f32.mrf.mxu0  ;;  %v714_v21 = vpop.f32.mrf.mxu1 }
 0x161   : > { %v648_v19 = vpop.f32.mrf.mxu2  ;;  %v744_v38 = vadd.f32 %v714_v21, %v676_v36  ;;  %v678_v48 = vadd.f32 %v672_v20, %v610_v43 }
 0x163   : > { %v746_v54 = vadd.f32 %v740_v18, %v678_v48 }
 0x166   : > { %v742_v24 = vpop.f32.mrf.mxu3 }
 0x168   : > { %v674_v29 = vpop.f32.mrf.mxu0  ;;  %v716_v30 = vpop.f32.mrf.mxu1 }
 0x169   : > { %v727_v27 = vpop.f32.mrf.mxu2 }
 0x16a   : > { %v745_v39 = vadd.f32 %v727_v27, %v677_v35 }
 0x170   : > { %v782_v44 = vpop.f32.mrf.mxu0  ;;  %v795_v45 = vpop.f32.mrf.mxu1 }
 0x171   : > { %v729_v40 = vpop.f32.mrf.mxu2  ;;  %v812_v46 = vadd.f32 %v782_v44, %v744_v38  ;;  %v813_v47 = vadd.f32 %v795_v45, %v745_v39 }
 0x173   : > { %v823_v49 = vmul.f32 %v817_v41, %v812_v46  ;;  %v824_v50 = vmul.f32 %v818_v42, %v813_v47 }
 0x175   : > { %v832_v51 = vmul.f32 %v823_v49, %v823_v49  ;;  %v833_v52 = vmul.f32 %v824_v50, %v824_v50  ;;  %v826_v53 = vadd.f32 %v824_v50, %v823_v49 }
 0x177   : > { %v835_v57 = vadd.f32 %v833_v52, %v832_v51 }
 0x178   : > { %v784_v59 = vpop.f32.mrf.mxu0  ;;  %v797_v60 = vpop.f32.mrf.mxu1 }
 0x179   : > { %v808_v56 = vpop.f32.mrf.mxu2 }
 0x17a   : > { %v814_v58 = vadd.f32 %v808_v56, %v746_v54 }
 0x17c   : > { %v825_v61 = vmul.f32 %v819_v55, %v814_v58 }
 0x17e   : > { %v827_v62 = vadd.f32 %v826_v53, %v825_v61  ;;  %v834_v63 = vmul.f32 %v825_v61, %v825_v61 }
 0x180   : > { %828 = vadd.xlane.f32.xlu2 %v827_v62  ;;  %v836_v0 = vadd.f32 %v835_v57, %v834_v63 }
 0x181   : > { %v810_v1 = vpop.f32.mrf.mxu2 }
 0x182   : > { %837 = vadd.xlane.f32.xlu0 %v836_v0 }
 0x1f3   : > { %v829_v2 = vpop.xlane.xlu2 %828 }
 0x1f4   : > { %831 = vst.msk [vmem:[%s202_s28] sm:$0xff] %vm830_vm10, %v829_v2 }
 0x1f5   : > { %v838_v3 = vpop.xlane.xlu0 %837 }
 0x1f6   : > { %839 = vst.msk [vmem:[%s206_s5] sm:$0xff] %vm830_vm10, %v838_v3 }
 0x1f7 PF: > { %s15_s15 = sadd.s32 1, %s993_s15  }
 0x1f8   : > { %p12_p4 = scmp.ge.s32.totalorder %s15_s15, 4  }
 0x1fa   :  { %14 = sbr.rel (!%p12_p4) target bundleno = 1 (0x1), region = 82 }

</bundles_post_ra>
